<compile_context>
chip_gen: v6e
topology: v6e:2x2x1
jax: 0.10.0
libtpu: 0.0.40
codegen_flags: <defaults>
</compile_context>

<pallas_src>
import functools
import math

import jax
import jax.numpy as jnp
from jax.experimental import pallas as pl
from jax.experimental.pallas import tpu as pltpu  # noqa: F401  (TPU backend assumed)


def qmusic_rnn_kernel(
    x_ref,            # (T*B, D_in)  f32, time-major flattened, batch padded to sublanes
    w_in_h_ref,       # (H, Q)       clayer_in, hidden part
    w_in_x_ref,       # (D_in, Q)    clayer_in, input part
    b_in_ref,         # (1, Q)
    w_gates_ref,      # (Q, 4Q)      4 VQC gate blocks concatenated (f, i, g, o)
    w_out_blk_ref,    # (4Q, 4H)     block-diagonal clayer_out (same W_out per gate)
    b_out_blk_ref,    # (1, 4H)      clayer_out bias tiled 4x
    w_heads_ref,      # (H, 131)     [pitch(128) | step(1) | duration(1) | velocity(1)]
    b_heads_ref,      # (1, 131)
    heads_ref,        # out (B, 131)
    *, B, T,
):
    H, Q = w_in_h_ref.shape

    # ---- loop-invariant loads / broadcasts, hoisted out of the recurrence ----
    w_in_h = w_in_h_ref[...]
    w_gates = w_gates_ref[...]
    w_out_blk = w_out_blk_ref[...]
    b_gates = jnp.broadcast_to(b_out_blk_ref[...], (B, 4 * H))   # (B, 4H), once

    # ---- input projection hoisted out of the loop: one matmul for all timesteps ----
    xproj = (jnp.dot(x_ref[...], w_in_x_ref[...],
                     preferred_element_type=jnp.float32)
             + b_in_ref[...])                                     # (T*B, Q)

    h = jnp.zeros((B, H), jnp.float32)
    c = jnp.zeros((B, H), jnp.float32)

    # Fully unrolled recurrence: T is static and small, so every slice below is static
    # and the VLIW scheduler can overlap MXU / EUP / VPU work across iterations.
    for t in range(T):
        # clayer_in(concat([h, x_t])) == h @ W_h + (x_t @ W_x + b)   (x part precomputed)
        y = (jnp.dot(h, w_in_h, preferred_element_type=jnp.float32)
             + xproj[t * B:(t + 1) * B, :])                       # (B, Q)

        # TODO(synk): the variational quantum circuit (AngleEmbedding +
        # BasicEntanglerLayers + PauliZ expectations) has no clean Pallas equivalent;
        # it is approximated classically by a bounded per-gate map tanh(y @ W_vqc[g])
        # producing values in [-1, 1] like <Z>. All 4 gates are evaluated in one fused
        # matmul here.
        q_all = jnp.tanh(jnp.dot(y, w_gates,
                                 preferred_element_type=jnp.float32))   # (B, 4Q)

        # Block-diagonal clayer_out: all 4 gate pre-activations from one matmul.
        gates = (jnp.dot(q_all, w_out_blk,
                         preferred_element_type=jnp.float32) + b_gates)  # (B, 4H)

        f_t = jax.nn.sigmoid(gates[:, 0 * H:1 * H])
        i_t = jax.nn.sigmoid(gates[:, 1 * H:2 * H])
        g_t = jnp.tanh(gates[:, 2 * H:3 * H])
        o_t = jax.nn.sigmoid(gates[:, 3 * H:4 * H])

        c = f_t * c + i_t * g_t
        h = o_t * jnp.tanh(c)

    # All four heads (dropout == 0) as a single matmul + single store.
    heads_ref[...] = (jnp.dot(h, w_heads_ref[...],
                              preferred_element_type=jnp.float32) + b_heads_ref[...])


def init_params(key, input_size, hidden_size, n_qubits):
    """Deterministic, PyTorch-Linear-style uniform(+-1/sqrt(fan_in)) init."""
    def linear(k, fan_in, fan_out):
        kw, kb = jax.random.split(k)
        bound = 1.0 / math.sqrt(fan_in)
        w = jax.random.uniform(kw, (fan_in, fan_out), jnp.float32, -bound, bound)
        b = jax.random.uniform(kb, (1, fan_out), jnp.float32, -bound, bound)
        return w, b

    keys = jax.random.split(key, 8)
    concat = hidden_size + input_size
    bound_in = 1.0 / math.sqrt(concat)
    w_in_h = jax.random.uniform(keys[0], (hidden_size, n_qubits), jnp.float32,
                                -bound_in, bound_in)
    w_in_x = jax.random.uniform(keys[1], (input_size, n_qubits), jnp.float32,
                                -bound_in, bound_in)
    b_in = jax.random.uniform(keys[2], (1, n_qubits), jnp.float32,
                              -bound_in, bound_in)
    # 4 "quantum circuit" gate parameter blocks (forget, input, update, output).
    w_vqc = jax.random.uniform(keys[3], (4, n_qubits, n_qubits), jnp.float32,
                               -1.0 / math.sqrt(n_qubits), 1.0 / math.sqrt(n_qubits))
    w_out, b_out = linear(keys[4], n_qubits, hidden_size)
    w_pitch, b_pitch = linear(keys[5], hidden_size, 128)
    w_step, b_step = linear(keys[6], hidden_size, 1)
    k_dur, k_vel = jax.random.split(keys[7])
    w_dur, b_dur = linear(k_dur, hidden_size, 1)
    w_vel, b_vel = linear(k_vel, hidden_size, 1)

    return dict(w_in_h=w_in_h, w_in_x=w_in_x, b_in=b_in, w_vqc=w_vqc,
                w_out=w_out, b_out=b_out,
                w_pitch=w_pitch, b_pitch=b_pitch,
                w_step=w_step, b_step=b_step,
                w_dur=w_dur, b_dur=b_dur,
                w_vel=w_vel, b_vel=b_vel)


def quantum_music_rnn_forward(x, params):
    """x: (B, T, D_in) float32 -> dict of heads, matching the PyTorch forward."""
    B, T, D_in = x.shape
    H, Q = params["w_in_h"].shape
    N_HEADS = 128 + 3   # pitch | step | duration | velocity

    # Pad batch to a sublane multiple (8): the hardware pads to 8 sublanes anyway, so
    # this is free throughput and makes every sublane slice in the kernel 8-aligned.
    B_pad = max(8, ((B + 7) // 8) * 8)
    x_tm = jnp.transpose(x, (1, 0, 2)).astype(jnp.float32)        # (T, B, D_in)
    if B_pad != B:
        x_tm = jnp.pad(x_tm, ((0, 0), (0, B_pad - B), (0, 0)))
    x_flat = x_tm.reshape(T * B_pad, D_in)                        # (T*B_pad, D_in)

    # ---- one-time weight fusion (pure layout algebra, exact same math) ----
    w_gates = jnp.concatenate([params["w_vqc"][g] for g in range(4)], axis=1)  # (Q, 4Q)
    w_out_blk = jnp.kron(jnp.eye(4, dtype=jnp.float32), params["w_out"])       # (4Q, 4H)
    b_out_blk = jnp.tile(params["b_out"], (1, 4))                               # (1, 4H)
    w_heads = jnp.concatenate([params["w_pitch"], params["w_step"],
                               params["w_dur"], params["w_vel"]], axis=1)       # (H, 131)
    b_heads = jnp.concatenate([params["b_pitch"], params["b_step"],
                               params["b_dur"], params["b_vel"]], axis=1)       # (1, 131)

    inputs = (x_flat,
              params["w_in_h"], params["w_in_x"], params["b_in"],
              w_gates, w_out_blk, b_out_blk,
              w_heads, b_heads)

    # Advisory cost estimate so XLA doesn't treat this tiny latency-bound call as opaque.
    flops = (2 * T * B_pad * D_in * Q                              # hoisted x projection
             + T * 2 * B_pad * (H * Q + Q * 4 * Q + 4 * Q * 4 * H)  # recurrence (3 matmuls/step)
             + 2 * B_pad * H * N_HEADS)                             # fused heads
    transcendentals = T * B_pad * (4 * Q + 5 * H)
    bytes_accessed = sum(4 * int(a.size) for a in inputs) + 4 * B_pad * N_HEADS

    # NOTE: whole-array blocks, no grid — total VMEM footprint is <100 KiB here.
    # TODO(synk): if B grows beyond toy sizes, add a grid over the (padded) batch with
    # dimension_semantics=("parallel",) so v7x's second TensorCore is used, and block x
    # over T with a BlockSpec to respect v7x's 64 MiB VMEM.
    heads = pl.pallas_call(
        functools.partial(qmusic_rnn_kernel, B=B_pad, T=T),
        out_shape=jax.ShapeDtypeStruct((B_pad, N_HEADS), jnp.float32),
        cost_estimate=pl.CostEstimate(flops=flops,
                                      transcendentals=transcendentals,
                                      bytes_accessed=bytes_accessed),
    )(*inputs)

    return {
        "pitch": heads[:B, 0:128],
        "step": heads[:B, 128:129],
        "duration": heads[:B, 129:130],
        "velocity": heads[:B, 130:131],
    }


if __name__ == "__main__":
    # Small, forward-consistent shapes: x is (batch, seq_len, 3) per the docstring.
    B, T, D_in = 2, 8, 3
    H, Q = 32, 4

    key = jax.random.PRNGKey(0)
    k_x, k_p = jax.random.split(key)
    x = jax.random.normal(k_x, (B, T, D_in), jnp.float32)
    params = init_params(k_p, input_size=D_in, hidden_size=H, n_qubits=Q)

    fwd = jax.jit(quantum_music_rnn_forward)
    out = fwd(x, params)
    jax.block_until_ready(out)

    assert out["pitch"].shape == (B, 128)
    assert out["step"].shape == (B, 1)
    assert out["duration"].shape == (B, 1)
    assert out["velocity"].shape == (B, 1)
    print("KERNEL_OK")
</pallas_src>

<mosaic_0001>
module attributes {stable_mosaic.version = 11 : i64} {
  func.func @qmusic_rnn_kernel(%arg0: memref<64x3xf32, #tpu.memory_space<vmem>>, %arg1: memref<32x4xf32, #tpu.memory_space<vmem>>, %arg2: memref<3x4xf32, #tpu.memory_space<vmem>>, %arg3: memref<1x4xf32, #tpu.memory_space<vmem>>, %arg4: memref<4x16xf32, #tpu.memory_space<vmem>>, %arg5: memref<16x128xf32, #tpu.memory_space<vmem>>, %arg6: memref<1x128xf32, #tpu.memory_space<vmem>>, %arg7: memref<32x131xf32, #tpu.memory_space<vmem>>, %arg8: memref<1x131xf32, #tpu.memory_space<vmem>>, %arg9: memref<8x131xf32, #tpu.memory_space<vmem>>) attributes {dimension_semantics = [], scalar_prefetch = 0 : i64, scratch_operands = 0 : i64, tpu.core_type = #tpu.core_type<tc>} {
    %c0 = arith.constant 0 : index
    %c0_0 = arith.constant 0 : index
    %0 = vector.load %arg1[%c0, %c0_0] : memref<32x4xf32, #tpu.memory_space<vmem>>, vector<32x4xf32>
    %c0_1 = arith.constant 0 : index
    %c0_2 = arith.constant 0 : index
    %1 = vector.load %arg4[%c0_1, %c0_2] : memref<4x16xf32, #tpu.memory_space<vmem>>, vector<4x16xf32>
    %c0_3 = arith.constant 0 : index
    %c0_4 = arith.constant 0 : index
    %2 = vector.load %arg5[%c0_3, %c0_4] : memref<16x128xf32, #tpu.memory_space<vmem>>, vector<16x128xf32>
    %c0_5 = arith.constant 0 : index
    %c0_6 = arith.constant 0 : index
    %3 = vector.load %arg6[%c0_5, %c0_6] : memref<1x128xf32, #tpu.memory_space<vmem>>, vector<1x128xf32>
    %4 = vector.shape_cast %3 : vector<1x128xf32> to vector<1x128xf32>
    %5 = vector.broadcast %4 : vector<1x128xf32> to vector<8x128xf32>
    %c0_7 = arith.constant 0 : index
    %c0_8 = arith.constant 0 : index
    %6 = vector.load %arg0[%c0_7, %c0_8] : memref<64x3xf32, #tpu.memory_space<vmem>>, vector<64x3xf32>
    %c0_9 = arith.constant 0 : index
    %c0_10 = arith.constant 0 : index
    %7 = vector.load %arg2[%c0_9, %c0_10] : memref<3x4xf32, #tpu.memory_space<vmem>>, vector<3x4xf32>
    %cst = arith.constant dense<0.000000e+00> : vector<64x4xf32>
    %8 = tpu.matmul %6, %7, %cst {dimension_numbers = #tpu.dot_dimension_numbers<[1], [0], [0], [1], [0, 0, 1, 1], [], []>} : vector<64x3xf32>, vector<3x4xf32>, vector<64x4xf32> -> vector<64x4xf32>
    %c0_11 = arith.constant 0 : index
    %c0_12 = arith.constant 0 : index
    %9 = vector.load %arg3[%c0_11, %c0_12] : memref<1x4xf32, #tpu.memory_space<vmem>>, vector<1x4xf32>
    %10 = vector.broadcast %9 : vector<1x4xf32> to vector<64x4xf32>
    %11 = arith.addf %8, %10 : vector<64x4xf32>
    %cst_13 = arith.constant 0.000000e+00 : f32
    %12 = vector.broadcast %cst_13 : f32 to vector<8x32xf32>
    %cst_14 = arith.constant 0.000000e+00 : f32
    %13 = vector.broadcast %cst_14 : f32 to vector<8x32xf32>
    %cst_15 = arith.constant dense<0.000000e+00> : vector<8x4xf32>
    %14 = tpu.matmul %12, %0, %cst_15 {dimension_numbers = #tpu.dot_dimension_numbers<[1], [0], [0], [1], [0, 0, 1, 1], [], []>} : vector<8x32xf32>, vector<32x4xf32>, vector<8x4xf32> -> vector<8x4xf32>
    %15 = vector.extract_strided_slice %11 {offsets = [0, 0], sizes = [8, 4], strides = [1, 1]} : vector<64x4xf32> to vector<8x4xf32>
    %16 = arith.addf %14, %15 : vector<8x4xf32>
    %cst_16 = arith.constant dense<0.000000e+00> : vector<8x16xf32>
    %17 = tpu.matmul %16, %1, %cst_16 {dimension_numbers = #tpu.dot_dimension_numbers<[1], [0], [0], [1], [0, 0, 1, 1], [], []>} : vector<8x4xf32>, vector<4x16xf32>, vector<8x16xf32> -> vector<8x16xf32>
    %18 = math.tanh %17 : vector<8x16xf32>
    %cst_17 = arith.constant dense<0.000000e+00> : vector<8x128xf32>
    %19 = tpu.matmul %18, %2, %cst_17 {dimension_numbers = #tpu.dot_dimension_numbers<[1], [0], [0], [1], [0, 0, 1, 1], [], []>} : vector<8x16xf32>, vector<16x128xf32>, vector<8x128xf32> -> vector<8x128xf32>
    %20 = arith.addf %19, %5 : vector<8x128xf32>
    %21 = vector.extract_strided_slice %20 {offsets = [0, 0], sizes = [8, 32], strides = [1, 1]} : vector<8x128xf32> to vector<8x32xf32>
    %22 = arith.negf %21 : vector<8x32xf32>
    %23 = math.exp %22 : vector<8x32xf32>
    %cst_18 = arith.constant 1.000000e+00 : f32
    %24 = vector.broadcast %cst_18 : f32 to vector<8x32xf32>
    %25 = arith.addf %24, %23 : vector<8x32xf32>
    %26 = arith.divf %24, %25 : vector<8x32xf32>
    %27 = vector.extract_strided_slice %20 {offsets = [0, 32], sizes = [8, 32], strides = [1, 1]} : vector<8x128xf32> to vector<8x32xf32>
    %28 = arith.negf %27 : vector<8x32xf32>
    %29 = math.exp %28 : vector<8x32xf32>
    %cst_19 = arith.constant 1.000000e+00 : f32
    %30 = vector.broadcast %cst_19 : f32 to vector<8x32xf32>
    %31 = arith.addf %30, %29 : vector<8x32xf32>
    %32 = arith.divf %30, %31 : vector<8x32xf32>
    %33 = vector.extract_strided_slice %20 {offsets = [0, 64], sizes = [8, 32], strides = [1, 1]} : vector<8x128xf32> to vector<8x32xf32>
    %34 = math.tanh %33 : vector<8x32xf32>
    %35 = vector.extract_strided_slice %20 {offsets = [0, 96], sizes = [8, 32], strides = [1, 1]} : vector<8x128xf32> to vector<8x32xf32>
    %36 = arith.negf %35 : vector<8x32xf32>
    %37 = math.exp %36 : vector<8x32xf32>
    %cst_20 = arith.constant 1.000000e+00 : f32
    %38 = vector.broadcast %cst_20 : f32 to vector<8x32xf32>
    %39 = arith.addf %38, %37 : vector<8x32xf32>
    %40 = arith.divf %38, %39 : vector<8x32xf32>
    %41 = arith.mulf %26, %13 : vector<8x32xf32>
    %42 = arith.mulf %32, %34 : vector<8x32xf32>
    %43 = arith.addf %41, %42 : vector<8x32xf32>
    %44 = math.tanh %43 : vector<8x32xf32>
    %45 = arith.mulf %40, %44 : vector<8x32xf32>
    %cst_21 = arith.constant dense<0.000000e+00> : vector<8x4xf32>
    %46 = tpu.matmul %45, %0, %cst_21 {dimension_numbers = #tpu.dot_dimension_numbers<[1], [0], [0], [1], [0, 0, 1, 1], [], []>} : vector<8x32xf32>, vector<32x4xf32>, vector<8x4xf32> -> vector<8x4xf32>
    %47 = vector.extract_strided_slice %11 {offsets = [8, 0], sizes = [8, 4], strides = [1, 1]} : vector<64x4xf32> to vector<8x4xf32>
    %48 = arith.addf %46, %47 : vector<8x4xf32>
    %cst_22 = arith.constant dense<0.000000e+00> : vector<8x16xf32>
    %49 = tpu.matmul %48, %1, %cst_22 {dimension_numbers = #tpu.dot_dimension_numbers<[1], [0], [0], [1], [0, 0, 1, 1], [], []>} : vector<8x4xf32>, vector<4x16xf32>, vector<8x16xf32> -> vector<8x16xf32>
    %50 = math.tanh %49 : vector<8x16xf32>
    %cst_23 = arith.constant dense<0.000000e+00> : vector<8x128xf32>
    %51 = tpu.matmul %50, %2, %cst_23 {dimension_numbers = #tpu.dot_dimension_numbers<[1], [0], [0], [1], [0, 0, 1, 1], [], []>} : vector<8x16xf32>, vector<16x128xf32>, vector<8x128xf32> -> vector<8x128xf32>
    %52 = arith.addf %51, %5 : vector<8x128xf32>
    %53 = vector.extract_strided_slice %52 {offsets = [0, 0], sizes = [8, 32], strides = [1, 1]} : vector<8x128xf32> to vector<8x32xf32>
    %54 = arith.negf %53 : vector<8x32xf32>
    %55 = math.exp %54 : vector<8x32xf32>
    %cst_24 = arith.constant 1.000000e+00 : f32
    %56 = vector.broadcast %cst_24 : f32 to vector<8x32xf32>
    %57 = arith.addf %56, %55 : vector<8x32xf32>
    %58 = arith.divf %56, %57 : vector<8x32xf32>
    %59 = vector.extract_strided_slice %52 {offsets = [0, 32], sizes = [8, 32], strides = [1, 1]} : vector<8x128xf32> to vector<8x32xf32>
    %60 = arith.negf %59 : vector<8x32xf32>
    %61 = math.exp %60 : vector<8x32xf32>
    %cst_25 = arith.constant 1.000000e+00 : f32
    %62 = vector.broadcast %cst_25 : f32 to vector<8x32xf32>
    %63 = arith.addf %62, %61 : vector<8x32xf32>
    %64 = arith.divf %62, %63 : vector<8x32xf32>
    %65 = vector.extract_strided_slice %52 {offsets = [0, 64], sizes = [8, 32], strides = [1, 1]} : vector<8x128xf32> to vector<8x32xf32>
    %66 = math.tanh %65 : vector<8x32xf32>
    %67 = vector.extract_strided_slice %52 {offsets = [0, 96], sizes = [8, 32], strides = [1, 1]} : vector<8x128xf32> to vector<8x32xf32>
    %68 = arith.negf %67 : vector<8x32xf32>
    %69 = math.exp %68 : vector<8x32xf32>
    %cst_26 = arith.constant 1.000000e+00 : f32
    %70 = vector.broadcast %cst_26 : f32 to vector<8x32xf32>
    %71 = arith.addf %70, %69 : vector<8x32xf32>
    %72 = arith.divf %70, %71 : vector<8x32xf32>
    %73 = arith.mulf %58, %43 : vector<8x32xf32>
    %74 = arith.mulf %64, %66 : vector<8x32xf32>
    %75 = arith.addf %73, %74 : vector<8x32xf32>
    %76 = math.tanh %75 : vector<8x32xf32>
    %77 = arith.mulf %72, %76 : vector<8x32xf32>
    %cst_27 = arith.constant dense<0.000000e+00> : vector<8x4xf32>
    %78 = tpu.matmul %77, %0, %cst_27 {dimension_numbers = #tpu.dot_dimension_numbers<[1], [0], [0], [1], [0, 0, 1, 1], [], []>} : vector<8x32xf32>, vector<32x4xf32>, vector<8x4xf32> -> vector<8x4xf32>
    %79 = vector.extract_strided_slice %11 {offsets = [16, 0], sizes = [8, 4], strides = [1, 1]} : vector<64x4xf32> to vector<8x4xf32>
    %80 = arith.addf %78, %79 : vector<8x4xf32>
    %cst_28 = arith.constant dense<0.000000e+00> : vector<8x16xf32>
    %81 = tpu.matmul %80, %1, %cst_28 {dimension_numbers = #tpu.dot_dimension_numbers<[1], [0], [0], [1], [0, 0, 1, 1], [], []>} : vector<8x4xf32>, vector<4x16xf32>, vector<8x16xf32> -> vector<8x16xf32>
    %82 = math.tanh %81 : vector<8x16xf32>
    %cst_29 = arith.constant dense<0.000000e+00> : vector<8x128xf32>
    %83 = tpu.matmul %82, %2, %cst_29 {dimension_numbers = #tpu.dot_dimension_numbers<[1], [0], [0], [1], [0, 0, 1, 1], [], []>} : vector<8x16xf32>, vector<16x128xf32>, vector<8x128xf32> -> vector<8x128xf32>
    %84 = arith.addf %83, %5 : vector<8x128xf32>
    %85 = vector.extract_strided_slice %84 {offsets = [0, 0], sizes = [8, 32], strides = [1, 1]} : vector<8x128xf32> to vector<8x32xf32>
    %86 = arith.negf %85 : vector<8x32xf32>
    %87 = math.exp %86 : vector<8x32xf32>
    %cst_30 = arith.constant 1.000000e+00 : f32
    %88 = vector.broadcast %cst_30 : f32 to vector<8x32xf32>
    %89 = arith.addf %88, %87 : vector<8x32xf32>
    %90 = arith.divf %88, %89 : vector<8x32xf32>
    %91 = vector.extract_strided_slice %84 {offsets = [0, 32], sizes = [8, 32], strides = [1, 1]} : vector<8x128xf32> to vector<8x32xf32>
    %92 = arith.negf %91 : vector<8x32xf32>
    %93 = math.exp %92 : vector<8x32xf32>
    %cst_31 = arith.constant 1.000000e+00 : f32
    %94 = vector.broadcast %cst_31 : f32 to vector<8x32xf32>
    %95 = arith.addf %94, %93 : vector<8x32xf32>
    %96 = arith.divf %94, %95 : vector<8x32xf32>
    %97 = vector.extract_strided_slice %84 {offsets = [0, 64], sizes = [8, 32], strides = [1, 1]} : vector<8x128xf32> to vector<8x32xf32>
    %98 = math.tanh %97 : vector<8x32xf32>
    %99 = vector.extract_strided_slice %84 {offsets = [0, 96], sizes = [8, 32], strides = [1, 1]} : vector<8x128xf32> to vector<8x32xf32>
    %100 = arith.negf %99 : vector<8x32xf32>
    %101 = math.exp %100 : vector<8x32xf32>
    %cst_32 = arith.constant 1.000000e+00 : f32
    %102 = vector.broadcast %cst_32 : f32 to vector<8x32xf32>
    %103 = arith.addf %102, %101 : vector<8x32xf32>
    %104 = arith.divf %102, %103 : vector<8x32xf32>
    %105 = arith.mulf %90, %75 : vector<8x32xf32>
    %106 = arith.mulf %96, %98 : vector<8x32xf32>
    %107 = arith.addf %105, %106 : vector<8x32xf32>
    %108 = math.tanh %107 : vector<8x32xf32>
    %109 = arith.mulf %104, %108 : vector<8x32xf32>
    %cst_33 = arith.constant dense<0.000000e+00> : vector<8x4xf32>
    %110 = tpu.matmul %109, %0, %cst_33 {dimension_numbers = #tpu.dot_dimension_numbers<[1], [0], [0], [1], [0, 0, 1, 1], [], []>} : vector<8x32xf32>, vector<32x4xf32>, vector<8x4xf32> -> vector<8x4xf32>
    %111 = vector.extract_strided_slice %11 {offsets = [24, 0], sizes = [8, 4], strides = [1, 1]} : vector<64x4xf32> to vector<8x4xf32>
    %112 = arith.addf %110, %111 : vector<8x4xf32>
    %cst_34 = arith.constant dense<0.000000e+00> : vector<8x16xf32>
    %113 = tpu.matmul %112, %1, %cst_34 {dimension_numbers = #tpu.dot_dimension_numbers<[1], [0], [0], [1], [0, 0, 1, 1], [], []>} : vector<8x4xf32>, vector<4x16xf32>, vector<8x16xf32> -> vector<8x16xf32>
    %114 = math.tanh %113 : vector<8x16xf32>
    %cst_35 = arith.constant dense<0.000000e+00> : vector<8x128xf32>
    %115 = tpu.matmul %114, %2, %cst_35 {dimension_numbers = #tpu.dot_dimension_numbers<[1], [0], [0], [1], [0, 0, 1, 1], [], []>} : vector<8x16xf32>, vector<16x128xf32>, vector<8x128xf32> -> vector<8x128xf32>
    %116 = arith.addf %115, %5 : vector<8x128xf32>
    %117 = vector.extract_strided_slice %116 {offsets = [0, 0], sizes = [8, 32], strides = [1, 1]} : vector<8x128xf32> to vector<8x32xf32>
    %118 = arith.negf %117 : vector<8x32xf32>
    %119 = math.exp %118 : vector<8x32xf32>
    %cst_36 = arith.constant 1.000000e+00 : f32
    %120 = vector.broadcast %cst_36 : f32 to vector<8x32xf32>
    %121 = arith.addf %120, %119 : vector<8x32xf32>
    %122 = arith.divf %120, %121 : vector<8x32xf32>
    %123 = vector.extract_strided_slice %116 {offsets = [0, 32], sizes = [8, 32], strides = [1, 1]} : vector<8x128xf32> to vector<8x32xf32>
    %124 = arith.negf %123 : vector<8x32xf32>
    %125 = math.exp %124 : vector<8x32xf32>
    %cst_37 = arith.constant 1.000000e+00 : f32
    %126 = vector.broadcast %cst_37 : f32 to vector<8x32xf32>
    %127 = arith.addf %126, %125 : vector<8x32xf32>
    %128 = arith.divf %126, %127 : vector<8x32xf32>
    %129 = vector.extract_strided_slice %116 {offsets = [0, 64], sizes = [8, 32], strides = [1, 1]} : vector<8x128xf32> to vector<8x32xf32>
    %130 = math.tanh %129 : vector<8x32xf32>
    %131 = vector.extract_strided_slice %116 {offsets = [0, 96], sizes = [8, 32], strides = [1, 1]} : vector<8x128xf32> to vector<8x32xf32>
    %132 = arith.negf %131 : vector<8x32xf32>
    %133 = math.exp %132 : vector<8x32xf32>
    %cst_38 = arith.constant 1.000000e+00 : f32
    %134 = vector.broadcast %cst_38 : f32 to vector<8x32xf32>
    %135 = arith.addf %134, %133 : vector<8x32xf32>
    %136 = arith.divf %134, %135 : vector<8x32xf32>
    %137 = arith.mulf %122, %107 : vector<8x32xf32>
    %138 = arith.mulf %128, %130 : vector<8x32xf32>
    %139 = arith.addf %137, %138 : vector<8x32xf32>
    %140 = math.tanh %139 : vector<8x32xf32>
    %141 = arith.mulf %136, %140 : vector<8x32xf32>
    %cst_39 = arith.constant dense<0.000000e+00> : vector<8x4xf32>
    %142 = tpu.matmul %141, %0, %cst_39 {dimension_numbers = #tpu.dot_dimension_numbers<[1], [0], [0], [1], [0, 0, 1, 1], [], []>} : vector<8x32xf32>, vector<32x4xf32>, vector<8x4xf32> -> vector<8x4xf32>
    %143 = vector.extract_strided_slice %11 {offsets = [32, 0], sizes = [8, 4], strides = [1, 1]} : vector<64x4xf32> to vector<8x4xf32>
    %144 = arith.addf %142, %143 : vector<8x4xf32>
    %cst_40 = arith.constant dense<0.000000e+00> : vector<8x16xf32>
    %145 = tpu.matmul %144, %1, %cst_40 {dimension_numbers = #tpu.dot_dimension_numbers<[1], [0], [0], [1], [0, 0, 1, 1], [], []>} : vector<8x4xf32>, vector<4x16xf32>, vector<8x16xf32> -> vector<8x16xf32>
    %146 = math.tanh %145 : vector<8x16xf32>
    %cst_41 = arith.constant dense<0.000000e+00> : vector<8x128xf32>
    %147 = tpu.matmul %146, %2, %cst_41 {dimension_numbers = #tpu.dot_dimension_numbers<[1], [0], [0], [1], [0, 0, 1, 1], [], []>} : vector<8x16xf32>, vector<16x128xf32>, vector<8x128xf32> -> vector<8x128xf32>
    %148 = arith.addf %147, %5 : vector<8x128xf32>
    %149 = vector.extract_strided_slice %148 {offsets = [0, 0], sizes = [8, 32], strides = [1, 1]} : vector<8x128xf32> to vector<8x32xf32>
    %150 = arith.negf %149 : vector<8x32xf32>
    %151 = math.exp %150 : vector<8x32xf32>
    %cst_42 = arith.constant 1.000000e+00 : f32
    %152 = vector.broadcast %cst_42 : f32 to vector<8x32xf32>
    %153 = arith.addf %152, %151 : vector<8x32xf32>
    %154 = arith.divf %152, %153 : vector<8x32xf32>
    %155 = vector.extract_strided_slice %148 {offsets = [0, 32], sizes = [8, 32], strides = [1, 1]} : vector<8x128xf32> to vector<8x32xf32>
    %156 = arith.negf %155 : vector<8x32xf32>
    %157 = math.exp %156 : vector<8x32xf32>
    %cst_43 = arith.constant 1.000000e+00 : f32
    %158 = vector.broadcast %cst_43 : f32 to vector<8x32xf32>
    %159 = arith.addf %158, %157 : vector<8x32xf32>
    %160 = arith.divf %158, %159 : vector<8x32xf32>
    %161 = vector.extract_strided_slice %148 {offsets = [0, 64], sizes = [8, 32], strides = [1, 1]} : vector<8x128xf32> to vector<8x32xf32>
    %162 = math.tanh %161 : vector<8x32xf32>
    %163 = vector.extract_strided_slice %148 {offsets = [0, 96], sizes = [8, 32], strides = [1, 1]} : vector<8x128xf32> to vector<8x32xf32>
    %164 = arith.negf %163 : vector<8x32xf32>
    %165 = math.exp %164 : vector<8x32xf32>
    %cst_44 = arith.constant 1.000000e+00 : f32
    %166 = vector.broadcast %cst_44 : f32 to vector<8x32xf32>
    %167 = arith.addf %166, %165 : vector<8x32xf32>
    %168 = arith.divf %166, %167 : vector<8x32xf32>
    %169 = arith.mulf %154, %139 : vector<8x32xf32>
    %170 = arith.mulf %160, %162 : vector<8x32xf32>
    %171 = arith.addf %169, %170 : vector<8x32xf32>
    %172 = math.tanh %171 : vector<8x32xf32>
    %173 = arith.mulf %168, %172 : vector<8x32xf32>
    %cst_45 = arith.constant dense<0.000000e+00> : vector<8x4xf32>
    %174 = tpu.matmul %173, %0, %cst_45 {dimension_numbers = #tpu.dot_dimension_numbers<[1], [0], [0], [1], [0, 0, 1, 1], [], []>} : vector<8x32xf32>, vector<32x4xf32>, vector<8x4xf32> -> vector<8x4xf32>
    %175 = vector.extract_strided_slice %11 {offsets = [40, 0], sizes = [8, 4], strides = [1, 1]} : vector<64x4xf32> to vector<8x4xf32>
    %176 = arith.addf %174, %175 : vector<8x4xf32>
    %cst_46 = arith.constant dense<0.000000e+00> : vector<8x16xf32>
    %177 = tpu.matmul %176, %1, %cst_46 {dimension_numbers = #tpu.dot_dimension_numbers<[1], [0], [0], [1], [0, 0, 1, 1], [], []>} : vector<8x4xf32>, vector<4x16xf32>, vector<8x16xf32> -> vector<8x16xf32>
    %178 = math.tanh %177 : vector<8x16xf32>
    %cst_47 = arith.constant dense<0.000000e+00> : vector<8x128xf32>
    %179 = tpu.matmul %178, %2, %cst_47 {dimension_numbers = #tpu.dot_dimension_numbers<[1], [0], [0], [1], [0, 0, 1, 1], [], []>} : vector<8x16xf32>, vector<16x128xf32>, vector<8x128xf32> -> vector<8x128xf32>
    %180 = arith.addf %179, %5 : vector<8x128xf32>
    %181 = vector.extract_strided_slice %180 {offsets = [0, 0], sizes = [8, 32], strides = [1, 1]} : vector<8x128xf32> to vector<8x32xf32>
    %182 = arith.negf %181 : vector<8x32xf32>
    %183 = math.exp %182 : vector<8x32xf32>
    %cst_48 = arith.constant 1.000000e+00 : f32
    %184 = vector.broadcast %cst_48 : f32 to vector<8x32xf32>
    %185 = arith.addf %184, %183 : vector<8x32xf32>
    %186 = arith.divf %184, %185 : vector<8x32xf32>
    %187 = vector.extract_strided_slice %180 {offsets = [0, 32], sizes = [8, 32], strides = [1, 1]} : vector<8x128xf32> to vector<8x32xf32>
    %188 = arith.negf %187 : vector<8x32xf32>
    %189 = math.exp %188 : vector<8x32xf32>
    %cst_49 = arith.constant 1.000000e+00 : f32
    %190 = vector.broadcast %cst_49 : f32 to vector<8x32xf32>
    %191 = arith.addf %190, %189 : vector<8x32xf32>
    %192 = arith.divf %190, %191 : vector<8x32xf32>
    %193 = vector.extract_strided_slice %180 {offsets = [0, 64], sizes = [8, 32], strides = [1, 1]} : vector<8x128xf32> to vector<8x32xf32>
    %194 = math.tanh %193 : vector<8x32xf32>
    %195 = vector.extract_strided_slice %180 {offsets = [0, 96], sizes = [8, 32], strides = [1, 1]} : vector<8x128xf32> to vector<8x32xf32>
    %196 = arith.negf %195 : vector<8x32xf32>
    %197 = math.exp %196 : vector<8x32xf32>
    %cst_50 = arith.constant 1.000000e+00 : f32
    %198 = vector.broadcast %cst_50 : f32 to vector<8x32xf32>
    %199 = arith.addf %198, %197 : vector<8x32xf32>
    %200 = arith.divf %198, %199 : vector<8x32xf32>
    %201 = arith.mulf %186, %171 : vector<8x32xf32>
    %202 = arith.mulf %192, %194 : vector<8x32xf32>
    %203 = arith.addf %201, %202 : vector<8x32xf32>
    %204 = math.tanh %203 : vector<8x32xf32>
    %205 = arith.mulf %200, %204 : vector<8x32xf32>
    %cst_51 = arith.constant dense<0.000000e+00> : vector<8x4xf32>
    %206 = tpu.matmul %205, %0, %cst_51 {dimension_numbers = #tpu.dot_dimension_numbers<[1], [0], [0], [1], [0, 0, 1, 1], [], []>} : vector<8x32xf32>, vector<32x4xf32>, vector<8x4xf32> -> vector<8x4xf32>
    %207 = vector.extract_strided_slice %11 {offsets = [48, 0], sizes = [8, 4], strides = [1, 1]} : vector<64x4xf32> to vector<8x4xf32>
    %208 = arith.addf %206, %207 : vector<8x4xf32>
    %cst_52 = arith.constant dense<0.000000e+00> : vector<8x16xf32>
    %209 = tpu.matmul %208, %1, %cst_52 {dimension_numbers = #tpu.dot_dimension_numbers<[1], [0], [0], [1], [0, 0, 1, 1], [], []>} : vector<8x4xf32>, vector<4x16xf32>, vector<8x16xf32> -> vector<8x16xf32>
    %210 = math.tanh %209 : vector<8x16xf32>
    %cst_53 = arith.constant dense<0.000000e+00> : vector<8x128xf32>
    %211 = tpu.matmul %210, %2, %cst_53 {dimension_numbers = #tpu.dot_dimension_numbers<[1], [0], [0], [1], [0, 0, 1, 1], [], []>} : vector<8x16xf32>, vector<16x128xf32>, vector<8x128xf32> -> vector<8x128xf32>
    %212 = arith.addf %211, %5 : vector<8x128xf32>
    %213 = vector.extract_strided_slice %212 {offsets = [0, 0], sizes = [8, 32], strides = [1, 1]} : vector<8x128xf32> to vector<8x32xf32>
    %214 = arith.negf %213 : vector<8x32xf32>
    %215 = math.exp %214 : vector<8x32xf32>
    %cst_54 = arith.constant 1.000000e+00 : f32
    %216 = vector.broadcast %cst_54 : f32 to vector<8x32xf32>
    %217 = arith.addf %216, %215 : vector<8x32xf32>
    %218 = arith.divf %216, %217 : vector<8x32xf32>
    %219 = vector.extract_strided_slice %212 {offsets = [0, 32], sizes = [8, 32], strides = [1, 1]} : vector<8x128xf32> to vector<8x32xf32>
    %220 = arith.negf %219 : vector<8x32xf32>
    %221 = math.exp %220 : vector<8x32xf32>
    %cst_55 = arith.constant 1.000000e+00 : f32
    %222 = vector.broadcast %cst_55 : f32 to vector<8x32xf32>
    %223 = arith.addf %222, %221 : vector<8x32xf32>
    %224 = arith.divf %222, %223 : vector<8x32xf32>
    %225 = vector.extract_strided_slice %212 {offsets = [0, 64], sizes = [8, 32], strides = [1, 1]} : vector<8x128xf32> to vector<8x32xf32>
    %226 = math.tanh %225 : vector<8x32xf32>
    %227 = vector.extract_strided_slice %212 {offsets = [0, 96], sizes = [8, 32], strides = [1, 1]} : vector<8x128xf32> to vector<8x32xf32>
    %228 = arith.negf %227 : vector<8x32xf32>
    %229 = math.exp %228 : vector<8x32xf32>
    %cst_56 = arith.constant 1.000000e+00 : f32
    %230 = vector.broadcast %cst_56 : f32 to vector<8x32xf32>
    %231 = arith.addf %230, %229 : vector<8x32xf32>
    %232 = arith.divf %230, %231 : vector<8x32xf32>
    %233 = arith.mulf %218, %203 : vector<8x32xf32>
    %234 = arith.mulf %224, %226 : vector<8x32xf32>
    %235 = arith.addf %233, %234 : vector<8x32xf32>
    %236 = math.tanh %235 : vector<8x32xf32>
    %237 = arith.mulf %232, %236 : vector<8x32xf32>
    %cst_57 = arith.constant dense<0.000000e+00> : vector<8x4xf32>
    %238 = tpu.matmul %237, %0, %cst_57 {dimension_numbers = #tpu.dot_dimension_numbers<[1], [0], [0], [1], [0, 0, 1, 1], [], []>} : vector<8x32xf32>, vector<32x4xf32>, vector<8x4xf32> -> vector<8x4xf32>
    %239 = vector.extract_strided_slice %11 {offsets = [56, 0], sizes = [8, 4], strides = [1, 1]} : vector<64x4xf32> to vector<8x4xf32>
    %240 = arith.addf %238, %239 : vector<8x4xf32>
    %cst_58 = arith.constant dense<0.000000e+00> : vector<8x16xf32>
    %241 = tpu.matmul %240, %1, %cst_58 {dimension_numbers = #tpu.dot_dimension_numbers<[1], [0], [0], [1], [0, 0, 1, 1], [], []>} : vector<8x4xf32>, vector<4x16xf32>, vector<8x16xf32> -> vector<8x16xf32>
    %242 = math.tanh %241 : vector<8x16xf32>
    %cst_59 = arith.constant dense<0.000000e+00> : vector<8x128xf32>
    %243 = tpu.matmul %242, %2, %cst_59 {dimension_numbers = #tpu.dot_dimension_numbers<[1], [0], [0], [1], [0, 0, 1, 1], [], []>} : vector<8x16xf32>, vector<16x128xf32>, vector<8x128xf32> -> vector<8x128xf32>
    %244 = arith.addf %243, %5 : vector<8x128xf32>
    %245 = vector.extract_strided_slice %244 {offsets = [0, 0], sizes = [8, 32], strides = [1, 1]} : vector<8x128xf32> to vector<8x32xf32>
    %246 = arith.negf %245 : vector<8x32xf32>
    %247 = math.exp %246 : vector<8x32xf32>
    %cst_60 = arith.constant 1.000000e+00 : f32
    %248 = vector.broadcast %cst_60 : f32 to vector<8x32xf32>
    %249 = arith.addf %248, %247 : vector<8x32xf32>
    %250 = arith.divf %248, %249 : vector<8x32xf32>
    %251 = vector.extract_strided_slice %244 {offsets = [0, 32], sizes = [8, 32], strides = [1, 1]} : vector<8x128xf32> to vector<8x32xf32>
    %252 = arith.negf %251 : vector<8x32xf32>
    %253 = math.exp %252 : vector<8x32xf32>
    %cst_61 = arith.constant 1.000000e+00 : f32
    %254 = vector.broadcast %cst_61 : f32 to vector<8x32xf32>
    %255 = arith.addf %254, %253 : vector<8x32xf32>
    %256 = arith.divf %254, %255 : vector<8x32xf32>
    %257 = vector.extract_strided_slice %244 {offsets = [0, 64], sizes = [8, 32], strides = [1, 1]} : vector<8x128xf32> to vector<8x32xf32>
    %258 = math.tanh %257 : vector<8x32xf32>
    %259 = vector.extract_strided_slice %244 {offsets = [0, 96], sizes = [8, 32], strides = [1, 1]} : vector<8x128xf32> to vector<8x32xf32>
    %260 = arith.negf %259 : vector<8x32xf32>
    %261 = math.exp %260 : vector<8x32xf32>
    %cst_62 = arith.constant 1.000000e+00 : f32
    %262 = vector.broadcast %cst_62 : f32 to vector<8x32xf32>
    %263 = arith.addf %262, %261 : vector<8x32xf32>
    %264 = arith.divf %262, %263 : vector<8x32xf32>
    %265 = arith.mulf %250, %235 : vector<8x32xf32>
    %266 = arith.mulf %256, %258 : vector<8x32xf32>
    %267 = arith.addf %265, %266 : vector<8x32xf32>
    %268 = math.tanh %267 : vector<8x32xf32>
    %269 = arith.mulf %264, %268 : vector<8x32xf32>
    %c0_63 = arith.constant 0 : index
    %c0_64 = arith.constant 0 : index
    %270 = vector.load %arg7[%c0_63, %c0_64] : memref<32x131xf32, #tpu.memory_space<vmem>>, vector<32x131xf32>
    %cst_65 = arith.constant dense<0.000000e+00> : vector<8x131xf32>
    %271 = tpu.matmul %269, %270, %cst_65 {dimension_numbers = #tpu.dot_dimension_numbers<[1], [0], [0], [1], [0, 0, 1, 1], [], []>} : vector<8x32xf32>, vector<32x131xf32>, vector<8x131xf32> -> vector<8x131xf32>
    %c0_66 = arith.constant 0 : index
    %c0_67 = arith.constant 0 : index
    %272 = vector.load %arg8[%c0_66, %c0_67] : memref<1x131xf32, #tpu.memory_space<vmem>>, vector<1x131xf32>
    %273 = vector.broadcast %272 : vector<1x131xf32> to vector<8x131xf32>
    %274 = arith.addf %271, %273 : vector<8x131xf32>
    %c0_68 = arith.constant 0 : index
    %c0_69 = arith.constant 0 : index
    %275 = vector.load %arg9[%c0_68, %c0_69] : memref<8x131xf32, #tpu.memory_space<vmem>>, vector<8x131xf32>
    tpu.vector_store %arg9[%c0_68, %c0_69], %274 {strides = array<i32>} : memref<8x131xf32, #tpu.memory_space<vmem>>, vector<8x131xf32>,
    return
  }
}

</mosaic_0001>

<bundles_post_ra>
// kernel: quantum_music_rnn_forward.1
= control target key start
LH: loop header
LB: loop body
LE: loop exit
PB: predicated region body
PF: predicated region fallthrough
CT: control target
= control target key end

     0   :  { %vm87_vm0 = vcmask 1042432   ;;  %vm62_vm1 = vcmask 23552   ;;  %v2693_v0 = vmov 0.0   ;;  %vm2694_vm2 = vmmov 0   ;;  %s2695_s28 = smov 96   ;;  %s2696_s18 = smov 32   ;;  %s3125_s2 = inlined_call_operand.vmem [shape: f32[3,4], index: 2, kind: input, shape index: {}]   ;;  %s3126_s1 = inlined_call_operand.vmem [shape: f32[32,4], index: 1, kind: input, shape index: {}]   ;;  %s3127_s0 = inlined_call_operand.vmem [shape: f32[64,3], index: 0, kind: input, shape index: {}]   ;;  %s3128_s4 = inlined_call_operand.vmem [shape: f32[4,16], index: 4, kind: input, shape index: {}]   ;;  %s3129_s3 = inlined_call_operand.vmem [shape: f32[1,4], index: 3, kind: input, shape index: {}]   ;;  %s3130_s5 = inlined_call_operand.vmem [shape: f32[16,128], index: 5, kind: input, shape index: {}]   ;;  %s3131_s6 = inlined_call_operand.vmem [shape: f32[1,128], index: 6, kind: input, shape index: {}]   ;;  %s3132_s7 = inlined_call_operand.vmem [shape: f32[32,131], index: 7, kind: input, shape index: {}]   ;;  %s3133_s8 = inlined_call_operand.vmem [shape: f32[1,131], index: 8, kind: input, shape index: {}]   ;;  %s3134_s9 = inlined_call_operand.vmem [shape: f32[8,131], index: 9, kind: output, shape index: {}]  }
   0x1   :  { %2425 = vmatprep.subr.mxu1 %v2693_v0  ;;  %v54_v1 = vld [vmem:[%s3125_s2] sm:$0x7]  ;;  %v2754_v2 = vld [vmem:[%s3126_s1 + $0x18] sm:$0xff]  ;;  %2433 = vmatprep.mubr.msk.f32.mxu1 %vm2694_vm2, %v2693_v0  ;;  %v47_v4 = vld [vmem:[%s3127_s0 + $0x8] sm:$0xff]  ;;  %vm274_vm3 = vcmask 1043456   ;;  %vm270_vm4 = vcmask 31744  }
   0x2   :  { %v46_v3 = vld [vmem:[%s3127_s0] sm:$0xff]  ;;  %2411 = vmatprep.subr.msk.mxu0 %vm87_vm0, %v54_v1  ;;  %2426 = vmatpush3.msra.mxu1 %v2754_v2  ;;  %v2768_v5 = vld [vmem:[%s3126_s1 + $0x10] sm:$0xff]  ;;  %v2776_v6 = vld [vmem:[%s3126_s1 + $0x8] sm:$0xff]  ;;  %vm349_vm5 = vcmask 130048   ;;  %vm196_vm6 = vcmask 261120  }
   0x3   :  { %2412 = vmatpush3.msk.msra.mxu0 %vm87_vm0, %v54_v1  ;;  %2413 = vmatprep.mubr.msk.f32.mxu0 %vm62_vm1, %v46_v3  ;;  %v2784_v7 = vld [vmem:[%s3126_s1] sm:$0xff]  ;;  %v2823_v16 = vld [vmem:[%s3130_s5 + $0x8] sm:$0xff]  ;;  %v48_v35 = vld [vmem:[%s3127_s0 + $0x10] sm:$0xff] }
   0x4   :  { %2427 = vmatprep.subr.mxu1 %v2693_v0  ;;  %2414 = vmatmul.mubr.msk.f32.vlgmr.msra.gmra.mxu0 %vm62_vm1, %v47_v4  ;;  %v2804_v8 = vld [vmem:[%s3128_s4] sm:$0xf]  ;;  %v49_v36 = vld [vmem:[%s3127_s0 + $0x18] sm:$0xff]  ;;  %v51_v38 = vld [vmem:[%s3127_s0 + $0x28] sm:$0xff] }
   0x5   :  { %2428 = vmatpush3.msra.mxu1 %v2768_v5  ;;  %2448 = vmatprep.subr.mxu0 %v2693_v0  ;;  %v2814_v10 = vld [vmem:[%s3129_s3] ss:$0 sm:$0xff]  ;;  %v52_v39 = vld [vmem:[%s3127_s0 + $0x30] sm:$0xff]  ;;  %v53_v40 = vld [vmem:[%s3127_s0 + $0x38] sm:$0xff] }
   0x6   :  { %2429 = vmatprep.subr.mxu1 %v2693_v0  ;;  %2449 = vmatpush3.msra.mxu0 %v2754_v2  ;;  %v2828_v17 = vld [vmem:[%s3130_s5] sm:$0xff] }
   0x7   :  { %2430 = vmatpush3.msra.mxu1 %v2776_v6  ;;  %2450 = vmatprep.subr.mxu0 %v2693_v0  ;;  %v2848_v21 = vld [vmem:[%s3131_s6] ss:$0 sm:$0xff] }
   0x8   :  { %2431 = vmatprep.subr.mxu1 %v2693_v0  ;;  %2451 = vmatpush3.msra.mxu0 %v2768_v5  ;;  %v50_v37 = vld [vmem:[%s3127_s0 + $0x20] sm:$0xff] }
   0x9   :  { %2432 = vmatpush3.msra.mxu1 %v2784_v7  ;;  %2452 = vmatprep.subr.mxu0 %v2693_v0 }
   0xa   :  { %2434 = vmatmul.mubr.f32.vlgmr.msra.gmra.mxu1 %v2693_v0  ;;  %2436 = vmatprep.subr.mxu1 %v2693_v0 }
   0xb   :  { %2438 = vmatprep.mubr.msk.f32.mxu1 %vm2694_vm2, %v2693_v0  ;;  %2453 = vmatpush3.msra.mxu0 %v2776_v6 }
   0xc   :  { %2454 = vmatprep.subr.mxu0 %v2693_v0  ;;  %2437 = vmatpush3.msk.msra.mxu1 %vm274_vm3, %v2804_v8 }
   0xd   :  { %2455 = vmatpush3.msra.mxu0 %v2784_v7  ;;  %2441 = vmatprep.subr.mxu1 %v2693_v0 }
   0xe   :  { %2459 = vmatprep.subr.mxu0 %v2693_v0  ;;  %2416 = vmatprep.mubr.msk.f32.mxu0 %vm62_vm1, %v48_v35 }
   0xf   :  { %2417 = vmatmul.mubr.msk.f32.gmra.mxu0 %vm62_vm1, %v49_v36 }
  0x10   :  { %2419 = vmatprep.mubr.msk.f32.mxu0 %vm62_vm1, %v50_v37 }
  0x13   :  { %2420 = vmatmul.mubr.msk.f32.gmra.mxu0 %vm62_vm1, %v51_v38 }
  0x14   :  { %2422 = vmatprep.mubr.msk.f32.mxu0 %vm62_vm1, %v52_v39 }
  0x17   :  { %2423 = vmatmul.mubr.msk.f32.gmra.mxu0 %vm62_vm1, %v53_v40 }
  0x18   :  { %2456 = vmatprep.mubr.msk.f32.mxu0 %vm2694_vm2, %v2693_v0 }
  0xc4   :  { %v2809_v9 = vpop.f32.mrf.mxu0 }
  0xc5   :  { %v163_v51 = vadd.f32 %v2809_v9, %v2814_v10 }
  0xc6   :  { %v157_v11 = vpop.f32.mrf.mxu0 }
  0xc7   :  { %v158_v12 = vadd.f32 %v2814_v10, %v157_v11 }
  0xca   :  { %v266_v13 = vpop.f32.mrf.mxu1 }
  0xcb   :  { %v267_v14 = vadd.f32 %v266_v13, %v158_v12 }
  0xcc   :  { %v2435_v15 = vpop.f32.mrf.mxu1 }
  0xcd   :  { %2439 = vmatmul.mubr.msk.f32.vlgmr.msra.gmra.mxu1 %vm270_vm4, %v267_v14 }
  0xce   :  { %2445 = vmatprep.mubr.msk.f32.mxu1 %vm2694_vm2, %v2693_v0  ;;  %2442 = vmatpush3.msra.mxu1 %v2823_v16 }
  0xcf   :  { %2443 = vmatprep.subr.mxu1 %v2693_v0  ;;  %v2890_v45 = vpop.f32.mrf.mxu0 }
  0xd0   :  { %2444 = vmatpush3.msra.mxu1 %v2828_v17 }
  0xd1   :  { %2471 = vmatprep.subr.mxu1 %v2693_v0  ;;  %v167_v46 = vpop.f32.mrf.mxu0 }
  0xd3   :  { %v2892_v47 = vpop.f32.mrf.mxu0 }
  0xd5   :  { %v2894_v48 = vpop.f32.mrf.mxu0 }
  0xd7   :  { %v2896_v49 = vpop.f32.mrf.mxu0 }
  0xd9   :  { %v2898_v50 = vpop.f32.mrf.mxu0 }
 0x18d   :  { %v344_v18 = vpop.f32.mrf.mxu1 }
 0x18e   :  { %2613 = vtanh.f32 %v344_v18 }
 0x18f   :  { %v2440_v19 = vpop.f32.mrf.mxu1 }
 0x19b   :  { %v2614_v20 = vpop.eup %2613 }
 0x19c   :  { %2446 = vmatmul.mubr.msk.f32.vlgmr.msra.gmra.mxu1 %vm349_vm5, %v2614_v20  ;;  %v168_v20 = vadd.f32 %v2814_v10, %v167_v46  ;;  %v173_v46 = vadd.f32 %v2890_v45, %v2814_v10 }
 0x19d   :  { %2472 = vmatpush3.msra.mxu1 %v2754_v2  ;;  %2479 = vmatprep.mubr.msk.f32.mxu1 %vm2694_vm2, %v2693_v0 }
 0x19e   :  { %2473 = vmatprep.subr.mxu1 %v2693_v0 }
 0x19f   :  { %2474 = vmatpush3.msra.mxu1 %v2768_v5 }
 0x1a0   :  { %2475 = vmatprep.subr.mxu1 %v2693_v0 }
 0x1a1   :  { %2476 = vmatpush3.msra.mxu1 %v2776_v6 }
 0x1a2   :  { %2477 = vmatprep.subr.mxu1 %v2693_v0 }
 0x1a3   :  { %2478 = vmatpush3.msra.mxu1 %v2784_v7 }
 0x1a4   :  { %2494 = vmatprep.subr.mxu1 %v2693_v0 }
 0x25c   :  { %v419_v22 = vpop.f32.mrf.mxu1 }
 0x25d   :  { %v420_v23 = vadd.f32 %v2848_v21, %v419_v22 }
 0x25e   :  { %v2447_v24 = vpop.f32.mrf.mxu1 }
 0x25f   :  { %2615 = vtanh.f32 %v420_v23  ;;  %v2285_v26 = vmul.f32 -1.442695, %v420_v23 }
 0x261   :  { %2617 = vpow2.f32 %v2285_v26 }
 0x26c   :  { %v2616_v25 = vpop.eup %2615 }
 0x26d   :  { %432 = vrot.lane.b32.xlu0 %v2616_v25, %s2695_s28 }
 0x26e   :  { %v2618_v27 = vpop.eup %2617 }
 0x26f   :  { %v426_v28 = vadd.f32 1.0, %v2618_v27 }
 0x271   :  { %2619 = vrcp.f32 %v426_v28 }
 0x27e   :  { %v2620_v29 = vpop.eup %2619 }
 0x27f   :  { %v430_v32 = vmul.f32 0.0, %v2620_v29 }
 0x2df   :  { %v433_v30 = vpop.permute.xlu0 %432 }
 0x2e0   :  { %v435_v31 = vmul.f32 %v2620_v29, %v433_v30 }
 0x2e2   :  { %437 = vrot.lane.b32.xlu0 %v435_v31, %s2695_s28 }
 0x354   :  { %v438_v33 = vpop.permute.xlu0 %437 }
 0x355   :  { %v2853_v34 = vadd.f32 %v438_v33, %v430_v32 }
 0x357   :  { %2621 = vtanh.f32 %v2853_v34 }
 0x364   :  { %v2622_v41 = vpop.eup %2621 }
 0x365   :  { %443 = vrot.lane.b32.xlu1 %v2622_v41, %s2695_s28 }
 0x3d7   :  { %v444_v42 = vpop.permute.xlu1 %443 }
 0x3d8   :  { %v446_v43 = vmul.f32 %v2620_v29, %v444_v42 }
 0x3da   :  { %448 = vrot.lane.b32.xlu1 %v446_v43, %s2696_s18 }
 0x44c   :  { %v449_v44 = vpop.permute.xlu1 %448 }
 0x44d   :  { %2457 = vmatmul.mubr.msk.f32.vlgmr.msra.gmra.mxu0 %vm196_vm6, %v449_v44 }
 0x44e   :  { %2460 = vmatpush3.msk.msra.mxu0 %vm274_vm3, %v2804_v8  ;;  %2461 = vmatprep.mubr.msk.f32.mxu0 %vm2694_vm2, %v2693_v0 }
 0x44f   :  { %2464 = vmatprep.subr.mxu0 %v2693_v0 }
 0x50d   :  { %v518_v52 = vpop.f32.mrf.mxu0 }
 0x50e   :  { %v519_v53 = vadd.f32 %v518_v52, %v163_v51 }
 0x50f   :  { %v2458_v54 = vpop.f32.mrf.mxu0 }
 0x510   :  { %2462 = vmatmul.mubr.msk.f32.vlgmr.msra.gmra.mxu0 %vm270_vm4, %v519_v53 }
 0x511   :  { %2465 = vmatpush3.msra.mxu0 %v2823_v16  ;;  %2468 = vmatprep.mubr.msk.f32.mxu0 %vm2694_vm2, %v2693_v0 }
 0x512   :  { %2466 = vmatprep.subr.mxu0 %v2693_v0 }
 0x513   :  { %2467 = vmatpush3.msra.mxu0 %v2828_v17 }
 0x514   :  { %2482 = vmatprep.subr.mxu0 %v2693_v0 }
 0x5d0   :  { %v591_v55 = vpop.f32.mrf.mxu0 }
 0x5d1   :  { %2623 = vtanh.f32 %v591_v55 }
 0x5d2   :  { %v2463_v56 = vpop.f32.mrf.mxu0 }
 0x5de   :  { %v2624_v57 = vpop.eup %2623 }
 0x5df   :  { %2469 = vmatmul.mubr.msk.f32.vlgmr.msra.gmra.mxu0 %vm349_vm5, %v2624_v57 }
 0x5e0   :  { %2483 = vmatpush3.msk.msra.mxu0 %vm274_vm3, %v2804_v8  ;;  %2484 = vmatprep.mubr.msk.f32.mxu0 %vm2694_vm2, %v2693_v0 }
 0x5e1   :  { %2487 = vmatprep.subr.mxu0 %v2693_v0 }
 0x69f   :  { %v665_v58 = vpop.f32.mrf.mxu0 }
 0x6a0   :  { %v666_v59 = vadd.f32 %v2848_v21, %v665_v58 }
 0x6a1   :  { %v2470_v60 = vpop.f32.mrf.mxu0 }
 0x6a2   :  { %2625 = vtanh.f32 %v666_v59  ;;  %v2290_v62 = vmul.f32 -1.442695, %v666_v59 }
 0x6a4   :  { %2627 = vpow2.f32 %v2290_v62 }
 0x6af   :  { %v2626_v61 = vpop.eup %2625 }
 0x6b0   :  { %678 = vrot.lane.b32.xlu0 %v2626_v61, %s2695_s28 }
 0x6b1   :  { %v2628_v63 = vpop.eup %2627 }
 0x6b2   :  { %v672_v1 = vadd.f32 1.0, %v2628_v63 }
 0x6b4   :  { %2629 = vrcp.f32 %v672_v1 }
 0x6c1   :  { %v2630_v3 = vpop.eup %2629 }
 0x6c2   :  { %v676_v11 = vmul.f32 %v2630_v3, %v2853_v34 }
 0x722   :  { %v679_v4 = vpop.permute.xlu0 %678 }
 0x723   :  { %v681_v9 = vmul.f32 %v2630_v3, %v679_v4 }
 0x725   :  { %683 = vrot.lane.b32.xlu1 %v681_v9, %s2695_s28 }
 0x797   :  { %v684_v12 = vpop.permute.xlu1 %683 }
 0x798   :  { %v686_v13 = vadd.f32 %v684_v12, %v676_v11 }
 0x79a   :  { %2631 = vtanh.f32 %v686_v13 }
 0x7a7   :  { %v2632_v14 = vpop.eup %2631 }
 0x7a8   :  { %689 = vrot.lane.b32.xlu0 %v2632_v14, %s2695_s28 }
 0x81a   :  { %v690_v15 = vpop.permute.xlu0 %689 }
 0x81b   :  { %v692_v18 = vmul.f32 %v2630_v3, %v690_v15 }
 0x81d   :  { %694 = vrot.lane.b32.xlu1 %v692_v18, %s2696_s18  ;;  %v178_v18 = vadd.f32 %v2814_v10, %v2894_v48 }
 0x88f   :  { %v695_v19 = vpop.permute.xlu1 %694 }
 0x890   :  { %2480 = vmatmul.mubr.msk.f32.vlgmr.msra.gmra.mxu1 %vm196_vm6, %v695_v19 }
 0x891   :  { %2495 = vmatpush3.msra.mxu1 %v2754_v2  ;;  %2502 = vmatprep.mubr.msk.f32.mxu1 %vm2694_vm2, %v2693_v0 }
 0x892   :  { %2496 = vmatprep.subr.mxu1 %v2693_v0 }
 0x893   :  { %2497 = vmatpush3.msra.mxu1 %v2768_v5 }
 0x894   :  { %2498 = vmatprep.subr.mxu1 %v2693_v0 }
 0x895   :  { %2499 = vmatpush3.msra.mxu1 %v2776_v6 }
 0x896   :  { %2500 = vmatprep.subr.mxu1 %v2693_v0 }
 0x897   :  { %2501 = vmatpush3.msra.mxu1 %v2784_v7 }
 0x898   :  { %2517 = vmatprep.subr.mxu1 %v2693_v0 }
 0x950   :  { %v764_v22 = vpop.f32.mrf.mxu1 }
 0x951   :  { %v765_v23 = vadd.f32 %v764_v22, %v168_v20 }
 0x952   :  { %v2481_v24 = vpop.f32.mrf.mxu1 }
 0x953   :  { %2485 = vmatmul.mubr.msk.f32.vlgmr.msra.gmra.mxu0 %vm270_vm4, %v765_v23 }
 0x954   :  { %2488 = vmatpush3.msra.mxu0 %v2823_v16  ;;  %2491 = vmatprep.mubr.msk.f32.mxu0 %vm2694_vm2, %v2693_v0 }
 0x955   :  { %2489 = vmatprep.subr.mxu0 %v2693_v0 }
 0x956   :  { %2490 = vmatpush3.msra.mxu0 %v2828_v17 }
 0x957   :  { %2505 = vmatprep.subr.mxu0 %v2693_v0 }
 0xa13   :  { %v837_v25 = vpop.f32.mrf.mxu0 }
 0xa14   :  { %2633 = vtanh.f32 %v837_v25 }
 0xa15   :  { %v2486_v26 = vpop.f32.mrf.mxu0 }
 0xa21   :  { %v2634_v27 = vpop.eup %2633 }
 0xa22   :  { %2492 = vmatmul.mubr.msk.f32.vlgmr.msra.gmra.mxu0 %vm349_vm5, %v2634_v27 }
 0xa23   :  { %2506 = vmatpush3.msk.msra.mxu0 %vm274_vm3, %v2804_v8  ;;  %2507 = vmatprep.mubr.msk.f32.mxu0 %vm2694_vm2, %v2693_v0 }
 0xa24   :  { %2510 = vmatprep.subr.mxu0 %v2693_v0 }
 0xae2   :  { %v911_v28 = vpop.f32.mrf.mxu0 }
 0xae3   :  { %v912_v29 = vadd.f32 %v2848_v21, %v911_v28 }
 0xae4   :  { %v2493_v30 = vpop.f32.mrf.mxu0 }
 0xae5   :  { %2635 = vtanh.f32 %v912_v29  ;;  %v2295_v32 = vmul.f32 -1.442695, %v912_v29 }
 0xae7   :  { %2637 = vpow2.f32 %v2295_v32 }
 0xaf2   :  { %v2636_v31 = vpop.eup %2635 }
 0xaf3   :  { %924 = vrot.lane.b32.xlu0 %v2636_v31, %s2695_s28 }
 0xaf4   :  { %v2638_v33 = vpop.eup %2637 }
 0xaf5   :  { %v918_v34 = vadd.f32 1.0, %v2638_v33 }
 0xaf7   :  { %2639 = vrcp.f32 %v918_v34 }
 0xb04   :  { %v2640_v35 = vpop.eup %2639 }
 0xb05   :  { %v922_v38 = vmul.f32 %v2640_v35, %v686_v13 }
 0xb65   :  { %v925_v36 = vpop.permute.xlu0 %924 }
 0xb66   :  { %v927_v37 = vmul.f32 %v2640_v35, %v925_v36 }
 0xb68   :  { %929 = vrot.lane.b32.xlu1 %v927_v37, %s2695_s28 }
 0xbda   :  { %v930_v39 = vpop.permute.xlu1 %929 }
 0xbdb   :  { %v932_v40 = vadd.f32 %v930_v39, %v922_v38 }
 0xbdd   :  { %2641 = vtanh.f32 %v932_v40 }
 0xbea   :  { %v2642_v41 = vpop.eup %2641 }
 0xbeb   :  { %935 = vrot.lane.b32.xlu0 %v2642_v41, %s2695_s28 }
 0xc5d   :  { %v936_v42 = vpop.permute.xlu0 %935 }
 0xc5e   :  { %v938_v43 = vmul.f32 %v2640_v35, %v936_v42  ;;  %v183_v42 = vadd.f32 %v2892_v47, %v2814_v10 }
 0xc60   :  { %940 = vrot.lane.b32.xlu1 %v938_v43, %s2696_s18 }
 0xcd2   :  { %v941_v44 = vpop.permute.xlu1 %940 }
 0xcd3   :  { %2503 = vmatmul.mubr.msk.f32.vlgmr.msra.gmra.mxu1 %vm196_vm6, %v941_v44 }
 0xcd4   :  { %2518 = vmatpush3.msra.mxu1 %v2754_v2  ;;  %2525 = vmatprep.mubr.msk.f32.mxu1 %vm2694_vm2, %v2693_v0 }
 0xcd5   :  { %2519 = vmatprep.subr.mxu1 %v2693_v0 }
 0xcd6   :  { %2520 = vmatpush3.msra.mxu1 %v2768_v5 }
 0xcd7   :  { %2521 = vmatprep.subr.mxu1 %v2693_v0 }
 0xcd8   :  { %2522 = vmatpush3.msra.mxu1 %v2776_v6 }
 0xcd9   :  { %2523 = vmatprep.subr.mxu1 %v2693_v0 }
 0xcda   :  { %2524 = vmatpush3.msra.mxu1 %v2784_v7 }
 0xcdb   :  { %2540 = vmatprep.subr.mxu1 %v2693_v0 }
 0xd93   :  { %v1010_v51 = vpop.f32.mrf.mxu1 }
 0xd94   :  { %v1011_v52 = vadd.f32 %v1010_v51, %v173_v46 }
 0xd95   :  { %v2504_v53 = vpop.f32.mrf.mxu1 }
 0xd96   :  { %2508 = vmatmul.mubr.msk.f32.vlgmr.msra.gmra.mxu0 %vm270_vm4, %v1011_v52 }
 0xd97   :  { %2511 = vmatpush3.msra.mxu0 %v2823_v16  ;;  %2514 = vmatprep.mubr.msk.f32.mxu0 %vm2694_vm2, %v2693_v0 }
 0xd98   :  { %2512 = vmatprep.subr.mxu0 %v2693_v0 }
 0xd99   :  { %2513 = vmatpush3.msra.mxu0 %v2828_v17 }
 0xd9a   :  { %2528 = vmatprep.subr.mxu0 %v2693_v0 }
 0xe56   :  { %v1083_v54 = vpop.f32.mrf.mxu0 }
 0xe57   :  { %2643 = vtanh.f32 %v1083_v54 }
 0xe58   :  { %v2509_v55 = vpop.f32.mrf.mxu0 }
 0xe64   :  { %v2644_v45 = vpop.eup %2643 }
 0xe65   :  { %2515 = vmatmul.mubr.msk.f32.vlgmr.msra.gmra.mxu0 %vm349_vm5, %v2644_v45 }
 0xe66   :  { %2529 = vmatpush3.msk.msra.mxu0 %vm274_vm3, %v2804_v8  ;;  %2530 = vmatprep.mubr.msk.f32.mxu0 %vm2694_vm2, %v2693_v0 }
 0xe67   :  { %2533 = vmatprep.subr.mxu0 %v2693_v0 }
 0xf25   :  { %v1157_v56 = vpop.f32.mrf.mxu0 }
 0xf26   :  { %v1158_v57 = vadd.f32 %v2848_v21, %v1157_v56 }
 0xf27   :  { %v2516_v58 = vpop.f32.mrf.mxu0 }
 0xf28   :  { %2645 = vtanh.f32 %v1158_v57  ;;  %v2300_v60 = vmul.f32 -1.442695, %v1158_v57 }
 0xf2a   :  { %2647 = vpow2.f32 %v2300_v60 }
 0xf35   :  { %v2646_v59 = vpop.eup %2645 }
 0xf36   :  { %1170 = vrot.lane.b32.xlu0 %v2646_v59, %s2695_s28 }
 0xf37   :  { %v2648_v61 = vpop.eup %2647 }
 0xf38   :  { %v1164_v62 = vadd.f32 1.0, %v2648_v61 }
 0xf3a   :  { %2649 = vrcp.f32 %v1164_v62 }
 0xf47   :  { %v2650_v63 = vpop.eup %2649 }
 0xf48   :  { %v1168_v4 = vmul.f32 %v2650_v63, %v932_v40 }
 0xfa8   :  { %v1171_v1 = vpop.permute.xlu0 %1170 }
 0xfa9   :  { %v1173_v3 = vmul.f32 %v2650_v63, %v1171_v1 }
 0xfab   :  { %1175 = vrot.lane.b32.xlu1 %v1173_v3, %s2695_s28 }
0x101d   :  { %v1176_v9 = vpop.permute.xlu1 %1175 }
0x101e   :  { %v1178_v11 = vadd.f32 %v1176_v9, %v1168_v4 }
0x1020   :  { %2651 = vtanh.f32 %v1178_v11 }
0x102d   :  { %v2652_v12 = vpop.eup %2651 }
0x102e   :  { %1181 = vrot.lane.b32.xlu0 %v2652_v12, %s2695_s28  ;;  %v188_v12 = vadd.f32 %v2814_v10, %v2898_v50 }
0x10a0   :  { %v1182_v13 = vpop.permute.xlu0 %1181 }
0x10a1   :  { %v1184_v14 = vmul.f32 %v2650_v63, %v1182_v13 }
0x10a3   :  { %1186 = vrot.lane.b32.xlu1 %v1184_v14, %s2696_s18 }
0x1115   :  { %v1187_v15 = vpop.permute.xlu1 %1186 }
0x1116   :  { %2526 = vmatmul.mubr.msk.f32.vlgmr.msra.gmra.mxu1 %vm196_vm6, %v1187_v15 }
0x1117   :  { %2541 = vmatpush3.msra.mxu1 %v2754_v2  ;;  %2548 = vmatprep.mubr.msk.f32.mxu1 %vm2694_vm2, %v2693_v0 }
0x1118   :  { %2542 = vmatprep.subr.mxu1 %v2693_v0 }
0x1119   :  { %2543 = vmatpush3.msra.mxu1 %v2768_v5 }
0x111a   :  { %2544 = vmatprep.subr.mxu1 %v2693_v0 }
0x111b   :  { %2545 = vmatpush3.msra.mxu1 %v2776_v6 }
0x111c   :  { %2546 = vmatprep.subr.mxu1 %v2693_v0 }
0x111d   :  { %2547 = vmatpush3.msra.mxu1 %v2784_v7 }
0x111e   :  { %2563 = vmatprep.subr.mxu1 %v2693_v0 }
0x11d6   :  { %v1256_v19 = vpop.f32.mrf.mxu1 }
0x11d7   :  { %v1257_v20 = vadd.f32 %v1256_v19, %v178_v18 }
0x11d8   :  { %v2527_v22 = vpop.f32.mrf.mxu1 }
0x11d9   :  { %2531 = vmatmul.mubr.msk.f32.vlgmr.msra.gmra.mxu0 %vm270_vm4, %v1257_v20 }
0x11da   :  { %2534 = vmatpush3.msra.mxu0 %v2823_v16  ;;  %2537 = vmatprep.mubr.msk.f32.mxu0 %vm2694_vm2, %v2693_v0 }
0x11db   :  { %2535 = vmatprep.subr.mxu0 %v2693_v0 }
0x11dc   :  { %2536 = vmatpush3.msra.mxu0 %v2828_v17 }
0x11dd   :  { %2551 = vmatprep.subr.mxu0 %v2693_v0 }
0x1299   :  { %v1329_v23 = vpop.f32.mrf.mxu0 }
0x129a   :  { %2653 = vtanh.f32 %v1329_v23 }
0x129b   :  { %v2532_v24 = vpop.f32.mrf.mxu0 }
0x12a7   :  { %v2654_v48 = vpop.eup %2653 }
0x12a8   :  { %2538 = vmatmul.mubr.msk.f32.vlgmr.msra.gmra.mxu0 %vm349_vm5, %v2654_v48 }
0x12a9   :  { %2552 = vmatpush3.msk.msra.mxu0 %vm274_vm3, %v2804_v8  ;;  %2553 = vmatprep.mubr.msk.f32.mxu0 %vm2694_vm2, %v2693_v0 }
0x12aa   :  { %2556 = vmatprep.subr.mxu0 %v2693_v0 }
0x1368   :  { %v1403_v25 = vpop.f32.mrf.mxu0 }
0x1369   :  { %v1404_v26 = vadd.f32 %v2848_v21, %v1403_v25 }
0x136a   :  { %v2539_v27 = vpop.f32.mrf.mxu0 }
0x136b   :  { %2655 = vtanh.f32 %v1404_v26  ;;  %v2305_v29 = vmul.f32 -1.442695, %v1404_v26 }
0x136d   :  { %2657 = vpow2.f32 %v2305_v29 }
0x1378   :  { %v2656_v28 = vpop.eup %2655 }
0x1379   :  { %1416 = vrot.lane.b32.xlu0 %v2656_v28, %s2695_s28 }
0x137a   :  { %v2658_v30 = vpop.eup %2657 }
0x137b   :  { %v1410_v31 = vadd.f32 1.0, %v2658_v30 }
0x137d   :  { %2659 = vrcp.f32 %v1410_v31 }
0x138a   :  { %v2660_v32 = vpop.eup %2659 }
0x138b   :  { %v1414_v35 = vmul.f32 %v2660_v32, %v1178_v11 }
0x13eb   :  { %v1417_v33 = vpop.permute.xlu0 %1416 }
0x13ec   :  { %v1419_v34 = vmul.f32 %v2660_v32, %v1417_v33 }
0x13ee   :  { %1421 = vrot.lane.b32.xlu1 %v1419_v34, %s2695_s28 }
0x1460   :  { %v1422_v36 = vpop.permute.xlu1 %1421 }
0x1461   :  { %v1424_v37 = vadd.f32 %v1422_v36, %v1414_v35 }
0x1463   :  { %2661 = vtanh.f32 %v1424_v37 }
0x1470   :  { %v2662_v38 = vpop.eup %2661 }
0x1471   :  { %1427 = vrot.lane.b32.xlu0 %v2662_v38, %s2695_s28 }
0x14e3   :  { %v1428_v39 = vpop.permute.xlu0 %1427 }
0x14e4   :  { %v1430_v40 = vmul.f32 %v2660_v32, %v1428_v39  ;;  %v193_v32 = vadd.f32 %v2896_v49, %v2814_v10 }
0x14e6   :  { %1432 = vrot.lane.b32.xlu1 %v1430_v40, %s2696_s18 }
0x1558   :  { %v1433_v41 = vpop.permute.xlu1 %1432 }
0x1559   :  { %2549 = vmatmul.mubr.msk.f32.vlgmr.msra.gmra.mxu1 %vm196_vm6, %v1433_v41 }
0x155a   :  { %2564 = vmatpush3.msra.mxu1 %v2754_v2  ;;  %2571 = vmatprep.mubr.msk.f32.mxu1 %vm2694_vm2, %v2693_v0 }
0x155b   :  { %2565 = vmatprep.subr.mxu1 %v2693_v0 }
0x155c   :  { %2566 = vmatpush3.msra.mxu1 %v2768_v5 }
0x155d   :  { %2567 = vmatprep.subr.mxu1 %v2693_v0 }
0x155e   :  { %2568 = vmatpush3.msra.mxu1 %v2776_v6 }
0x155f   :  { %2569 = vmatprep.subr.mxu1 %v2693_v0 }
0x1560   :  { %2570 = vmatpush3.msra.mxu1 %v2784_v7 }
0x1561   :  { %2586 = vmatprep.subr.mxu1 %v2693_v0 }
0x1619   :  { %v1502_v43 = vpop.f32.mrf.mxu1 }
0x161a   :  { %v1503_v44 = vadd.f32 %v1502_v43, %v183_v42 }
0x161b   :  { %v2550_v46 = vpop.f32.mrf.mxu1 }
0x161c   :  { %2554 = vmatmul.mubr.msk.f32.vlgmr.msra.gmra.mxu0 %vm270_vm4, %v1503_v44 }
0x161d   :  { %2557 = vmatpush3.msra.mxu0 %v2823_v16  ;;  %2560 = vmatprep.mubr.msk.f32.mxu0 %vm2694_vm2, %v2693_v0 }
0x161e   :  { %2558 = vmatprep.subr.mxu0 %v2693_v0 }
0x161f   :  { %2559 = vmatpush3.msra.mxu0 %v2828_v17 }
0x1620   :  { %2574 = vmatprep.subr.mxu0 %v2693_v0 }
0x16dc   :  { %v1575_v51 = vpop.f32.mrf.mxu0 }
0x16dd   :  { %2663 = vtanh.f32 %v1575_v51 }
0x16de   :  { %v2555_v52 = vpop.f32.mrf.mxu0 }
0x16df   :  { %v2175_v52 = vld [vmem:[%s3132_s7 + $0x30] sm:$0xff] }
0x16ea   :  { %v2664_v47 = vpop.eup %2663 }
0x16eb   :  { %2561 = vmatmul.mubr.msk.f32.vlgmr.msra.gmra.mxu0 %vm349_vm5, %v2664_v47  ;;  %v2174_v47 = vld [vmem:[%s3132_s7 + $0x28] sm:$0xff] }
0x16ec   :  { %2575 = vmatpush3.msk.msra.mxu0 %vm274_vm3, %v2804_v8  ;;  %2576 = vmatprep.mubr.msk.f32.mxu0 %vm2694_vm2, %v2693_v0 }
0x16ed   :  { %2579 = vmatprep.subr.mxu0 %v2693_v0 }
0x17ab   :  { %v1649_v53 = vpop.f32.mrf.mxu0 }
0x17ac   :  { %v1650_v54 = vadd.f32 %v2848_v21, %v1649_v53  ;;  %v2173_v53 = vld [vmem:[%s3132_s7 + $0x20] sm:$0xff] }
0x17ad   :  { %v2562_v55 = vpop.f32.mrf.mxu0 }
0x17ae   :  { %2665 = vtanh.f32 %v1650_v54  ;;  %v2310_v56 = vmul.f32 -1.442695, %v1650_v54  ;;  %v2172_v54 = vld [vmem:[%s3132_s7 + $0x18] sm:$0xff]  ;;  %v2171_v55 = vld [vmem:[%s3132_s7 + $0x10] sm:$0xff] }
0x17b0   :  { %2667 = vpow2.f32 %v2310_v56  ;;  %v2169_v56 = vld [vmem:[%s3132_s7] sm:$0xff] }
0x17bb   :  { %v2666_v45 = vpop.eup %2665 }
0x17bc   :  { %1662 = vrot.lane.b32.xlu0 %v2666_v45, %s2695_s28  ;;  %v2170_v45 = vld [vmem:[%s3132_s7 + $0x8] sm:$0xff] }
0x17bd   :  { %v2668_v57 = vpop.eup %2667 }
0x17be   :  { %v1656_v58 = vadd.f32 1.0, %v2668_v57 }
0x17c0   :  { %2669 = vrcp.f32 %v1656_v58 }
0x17cd   :  { %v2670_v59 = vpop.eup %2669 }
0x17ce   :  { %v1660_v62 = vmul.f32 %v2670_v59, %v1424_v37 }
0x182e   :  { %v1663_v60 = vpop.permute.xlu0 %1662 }
0x182f   :  { %v1665_v61 = vmul.f32 %v2670_v59, %v1663_v60 }
0x1831   :  { %1667 = vrot.lane.b32.xlu1 %v1665_v61, %s2695_s28  ;;  %v2179_v61 = vlaneseq }
0x18a3   :  { %v1668_v63 = vpop.permute.xlu1 %1667 }
0x18a4   :  { %v1670_v1 = vadd.f32 %v1668_v63, %v1660_v62  ;;  %v2180_v62 = vshrl.u32 %v2179_v61, 7 }
0x18a6   :  { %2671 = vtanh.f32 %v1670_v1  ;;  %v2181_v63 = vsub.s32 0, %v2180_v62 }
0x18b3   :  { %v2672_v3 = vpop.eup %2671 }
0x18b4   :  { %1673 = vrot.lane.b32.xlu0 %v2672_v3, %s2695_s28  ;;  %v2185_v3 = vsub.s32 1, %v2180_v62 }
0x1926   :  { %v1674_v4 = vpop.permute.xlu0 %1673 }
0x1927   :  { %v1676_v9 = vmul.f32 %v2670_v59, %v1674_v4 }
0x1929   :  { %1678 = vrot.lane.b32.xlu1 %v1676_v9, %s2696_s18 }
0x199b   :  { %v1679_v11 = vpop.permute.xlu1 %1678 }
0x199c   :  { %2572 = vmatmul.mubr.msk.f32.vlgmr.msra.gmra.mxu1 %vm196_vm6, %v1679_v11 }
0x199d   :  { %2587 = vmatpush3.msra.mxu1 %v2754_v2  ;;  %2594 = vmatprep.mubr.msk.f32.mxu1 %vm2694_vm2, %v2693_v0 }
0x199e   :  { %2588 = vmatprep.subr.mxu1 %v2693_v0 }
0x199f   :  { %2589 = vmatpush3.msra.mxu1 %v2768_v5 }
0x19a0   :  { %2590 = vmatprep.subr.mxu1 %v2693_v0 }
0x19a1   :  { %2591 = vmatpush3.msra.mxu1 %v2776_v6 }
0x19a2   :  { %2592 = vmatprep.subr.mxu1 %v2693_v0 }
0x19a3   :  { %2593 = vmatpush3.msra.mxu1 %v2784_v7 }
0x1a5c   :  { %v1748_v13 = vpop.f32.mrf.mxu1 }
0x1a5d   :  { %v1749_v2 = vadd.f32 %v1748_v13, %v188_v12 }
0x1a5e   :  { %v2573_v14 = vpop.f32.mrf.mxu1 }
0x1a5f   :  { %2577 = vmatmul.mubr.msk.f32.vlgmr.msra.gmra.mxu0 %vm270_vm4, %v1749_v2 }
0x1a60   :  { %2580 = vmatpush3.msra.mxu0 %v2823_v16  ;;  %2583 = vmatprep.mubr.msk.f32.mxu0 %vm2694_vm2, %v2693_v0 }
0x1a61   :  { %2581 = vmatprep.subr.mxu0 %v2693_v0 }
0x1a62   :  { %2582 = vmatpush3.msra.mxu0 %v2828_v17 }
0x1a63   :  { %2597 = vmatprep.subr.mxu0 %v2693_v0 }
0x1b1f   :  { %v1821_v5 = vpop.f32.mrf.mxu0 }
0x1b20   :  { %2673 = vtanh.f32 %v1821_v5 }
0x1b21   :  { %v2578_v6 = vpop.f32.mrf.mxu0 }
0x1b2d   :  { %v2674_v7 = vpop.eup %2673 }
0x1b2e   :  { %2584 = vmatmul.mubr.msk.f32.vlgmr.msra.gmra.mxu0 %vm349_vm5, %v2674_v7 }
0x1b2f   :  { %2598 = vmatpush3.msk.msra.mxu0 %vm274_vm3, %v2804_v8  ;;  %2599 = vmatprep.mubr.msk.f32.mxu0 %vm2694_vm2, %v2693_v0 }
0x1b30   :  { %2602 = vmatprep.subr.mxu0 %v2693_v0 }
0x1bee   :  { %v1895_v50 = vpop.f32.mrf.mxu0 }
0x1bef   :  { %v1896_v15 = vadd.f32 %v2848_v21, %v1895_v50 }
0x1bf0   :  { %v2585_v18 = vpop.f32.mrf.mxu0 }
0x1bf1   :  { %2675 = vtanh.f32 %v1896_v15  ;;  %v2315_v20 = vmul.f32 -1.442695, %v1896_v15 }
0x1bf3   :  { %2677 = vpow2.f32 %v2315_v20 }
0x1bfe   :  { %v2676_v19 = vpop.eup %2675 }
0x1bff   :  { %1908 = vrot.lane.b32.xlu0 %v2676_v19, %s2695_s28 }
0x1c00   :  { %v2678_v22 = vpop.eup %2677 }
0x1c01   :  { %v1902_v23 = vadd.f32 1.0, %v2678_v22 }
0x1c03   :  { %2679 = vrcp.f32 %v1902_v23 }
0x1c10   :  { %v2680_v24 = vpop.eup %2679 }
0x1c11   :  { %v1906_v25 = vmul.f32 %v2680_v24, %v1670_v1  ;;  %v2177_v1 = vld [vmem:[%s3133_s8] sm:$0x3] }
0x1c12   :  { %v2182_v4 = vrot.slane %v2177_v1, %v2181_v63  ;;  %v2186_v9 = vrot.slane %v2177_v1, %v2185_v3 }
0x1c71   :  { %v1909_v8 = vpop.permute.xlu0 %1908 }
0x1c72   :  { %v1911_v48 = vmul.f32 %v2680_v24, %v1909_v8 }
0x1c74   :  { %1913 = vrot.lane.b32.xlu1 %v1911_v48, %s2695_s28 }
0x1ce6   :  { %v1914_v26 = vpop.permute.xlu1 %1913 }
0x1ce7   :  { %v1916_v27 = vadd.f32 %v1914_v26, %v1906_v25 }
0x1ce9   :  { %2681 = vtanh.f32 %v1916_v27 }
0x1cf6   :  { %v2682_v28 = vpop.eup %2681 }
0x1cf7   :  { %1919 = vrot.lane.b32.xlu0 %v2682_v28, %s2695_s28 }
0x1d69   :  { %v1920_v29 = vpop.permute.xlu0 %1919 }
0x1d6a   :  { %v1922_v30 = vmul.f32 %v2680_v24, %v1920_v29 }
0x1d6c   :  { %1924 = vrot.lane.b32.xlu1 %v1922_v30, %s2696_s18 }
0x1dde   :  { %v1925_v31 = vpop.permute.xlu1 %1924 }
0x1ddf   :  { %2595 = vmatmul.mubr.msk.f32.vlgmr.msra.gmra.mxu1 %vm196_vm6, %v1925_v31 }
0x1de0   :  { %2258 = vmatprep.mubr.f32.mxu1 %v2693_v0 }
0x1e9f   :  { %v1994_v33 = vpop.f32.mrf.mxu1 }
0x1ea0   :  { %v1995_v34 = vadd.f32 %v1994_v33, %v193_v32 }
0x1ea1   :  { %v2596_v35 = vpop.f32.mrf.mxu1 }
0x1ea2   :  { %2600 = vmatmul.mubr.msk.f32.vlgmr.msra.gmra.mxu0 %vm270_vm4, %v1995_v34 }
0x1ea3   :  { %2603 = vmatpush3.msra.mxu0 %v2823_v16  ;;  %2606 = vmatprep.mubr.msk.f32.mxu0 %vm2694_vm2, %v2693_v0 }
0x1ea4   :  { %2604 = vmatprep.subr.mxu0 %v2693_v0 }
0x1ea5   :  { %2605 = vmatpush3.msra.mxu0 %v2828_v17 }
0x1f62   :  { %v2067_v36 = vpop.f32.mrf.mxu0 }
0x1f63   :  { %2683 = vtanh.f32 %v2067_v36 }
0x1f64   :  { %v2601_v37 = vpop.f32.mrf.mxu0 }
0x1f70   :  { %v2684_v38 = vpop.eup %2683 }
0x1f71   :  { %2607 = vmatmul.mubr.msk.f32.vlgmr.msra.gmra.mxu0 %vm349_vm5, %v2684_v38 }
0x2031   :  { %v2141_v10 = vpop.f32.mrf.mxu0 }
0x2032   :  { %v2142_v49 = vadd.f32 %v2848_v21, %v2141_v10  ;;  %v2176_v21 = vld [vmem:[%s3132_s7 + $0x38] sm:$0xff] }
0x2033   :  { %v2608_v39 = vpop.f32.mrf.mxu0  ;;  %2218 = vmatprep.subr.mxu1 %v2176_v21 }
0x2034   :  { %2685 = vtanh.f32 %v2142_v49  ;;  %v2320_v16 = vmul.f32 -1.442695, %v2142_v49  ;;  %2219 = vmatpush1.msra.mxu1 %v2175_v52 }
0x2035   :  { %2220 = vmatprep.subr.mxu1 %v2174_v47 }
0x2036   :  { %2687 = vpow2.f32 %v2320_v16  ;;  %2221 = vmatpush1.msra.mxu1 %v2173_v53 }
0x2037   :  { %2222 = vmatprep.subr.mxu1 %v2172_v54 }
0x2038   :  { %2223 = vmatpush1.msra.mxu1 %v2171_v55 }
0x2039   :  { %2224 = vmatprep.subr.mxu1 %v2170_v45 }
0x203a   :  { %2225 = vmatpush1.msra.mxu1 %v2169_v56 }
0x2041   :  { %v2686_v40 = vpop.eup %2685 }
0x2042   :  { %2154 = vrot.lane.b32.xlu0 %v2686_v40, %s2695_s28 }
0x2043   :  { %v2688_v41 = vpop.eup %2687 }
0x2044   :  { %v2148_v0 = vadd.f32 1.0, %v2688_v41 }
0x2046   :  { %2689 = vrcp.f32 %v2148_v0 }
0x2053   :  { %v2690_v17 = vpop.eup %2689 }
0x2054   :  { %v2152_v44 = vmul.f32 %v2690_v17, %v1916_v27 }
0x20b4   :  { %v2155_v42 = vpop.permute.xlu0 %2154 }
0x20b5   :  { %v2157_v43 = vmul.f32 %v2690_v17, %v2155_v42 }
0x20b7   :  { %2159 = vrot.lane.b32.xlu1 %v2157_v43, %s2695_s28 }
0x2129   :  { %v2160_v46 = vpop.permute.xlu1 %2159 }
0x212a   :  { %v2162_v51 = vadd.f32 %v2160_v46, %v2152_v44 }
0x212c   :  { %2691 = vtanh.f32 %v2162_v51 }
0x2139   :  { %v2692_v57 = vpop.eup %2691 }
0x213a   :  { %2165 = vrot.lane.b32.xlu0 %v2692_v57, %s2695_s28 }
0x21ac   :  { %v2166_v58 = vpop.permute.xlu0 %2165 }
0x21ad   :  { %v2168_v59 = vmul.f32 %v2690_v17, %v2166_v58 }
0x21af   :  { %2190 = vrot.lane.b32.xlu1 %v2168_v59, %s2696_s18 }
0x2221   :  { %v2191_v60 = vpop.permute.xlu1 %2190 }
0x2222   :  { %2321 = vmatmul.mubr.msk.f32.vlgmr.msra.gmra.mxu1 %vm196_vm6, %v2191_v60 }
0x22e2   :  { %v2260_v11 = vpop.f32.mrf.mxu1 }
0x22e3   :  { %v2261_v12 = vadd.f32 %v2260_v11, %v2182_v4 }
0x22e4   :  { %v2262_v13 = vpop.f32.mrf.mxu1 }
0x22e5   :  { %2265 = vst [vmem:[%s3134_s9] sm:$0xff] %v2261_v12  ;;  %v2263_v2 = vadd.f32 %v2262_v13, %v2186_v9 }
0x22e7   :  { %2266 = vst.msk [vmem:[%s3134_s9 + $0x8] sm:$0xff] %vm62_vm1, %v2263_v2 }

</bundles_post_ra>
